<compile_context>
chip_gen: v7x
topology: tpu7x:2x2x1
jax: 0.10.0
libtpu: 0.0.40
codegen_flags: <defaults>
</compile_context>

<pallas_src>
import functools

import jax
import jax.numpy as jnp
from jax import lax
from jax.experimental import pallas as pl
from jax.experimental.pallas import tpu as pltpu


def _round_up(x, m):
    return ((x + m - 1) // m) * m


def _object_relation_kernel(
    x_ref,      # (M, Cpad)      all relation blocks, flattened + lane-padded
    wqkv_ref,   # (Cpad, 3*Ipad) fused theta|phi|g weight (transposed, padded)
    bqkv_ref,   # (1, 3*Ipad)    fused bias (padded)
    ww_ref,     # (Ipad, Cpad)   output projection W (transposed, padded)
    bw_ref,     # (1, Cpad)
    z_ref,      # (M, Cpad)      output
    *,
    inter_pad,  # static: padded inter_channels (128-lane aligned)
    block_len,  # static: N  (rows per relation block)
    num_blocks, # static: B  (number of independent relation blocks)
):
    x = x_ref[...].astype(jnp.float32)  # (M, Cpad); padded lanes are zero.

    # Single fused projection matmul: (M, Cpad) @ (Cpad, 3*Ipad) -> (M, 3*Ipad).
    qkv = jnp.dot(x, wqkv_ref[...], preferred_element_type=jnp.float32) + bqkv_ref[...]
    # 128-lane-aligned static slices (inter_pad is a multiple of 128).
    theta_x = qkv[:, :inter_pad]
    phi_x = qkv[:, inter_pad:2 * inter_pad]
    g_x = qkv[:, 2 * inter_pad:]

    # f = theta @ phi^T without materializing a transpose of phi; padded
    # inter lanes are zero on both operands so they contribute nothing.
    f = lax.dot_general(
        theta_x, phi_x,
        dimension_numbers=(((1,), (1,)), ((), ())),
        preferred_element_type=jnp.float32,
    )  # (M, M)

    # Block-diagonal mask: each of the `num_blocks` relation blocks of
    # `block_len` rows only attends within itself (exactly reproduces running
    # the module independently per block).
    if num_blocks > 1:
        m_total = num_blocks * block_len
        row_blk = lax.broadcasted_iota(jnp.int32, (m_total, m_total), 0) // block_len
        col_blk = lax.broadcasted_iota(jnp.int32, (m_total, m_total), 1) // block_len
        f = jnp.where(row_blk == col_blk, f, jnp.float32(-1e30))

    # Row-wise softmax over the last axis.
    f_max = jnp.max(f, axis=-1, keepdims=True)
    f_exp = jnp.exp(f - f_max)
    f_sum = jnp.sum(f_exp, axis=-1, keepdims=True)
    f_div_c = f_exp * pl.reciprocal(f_sum, approx=True)  # EUP reciprocal

    # y = softmax @ g  -> (M, Ipad); output projection + residual.
    y = jnp.dot(f_div_c, g_x, preferred_element_type=jnp.float32)
    w_y = jnp.dot(y, ww_ref[...], preferred_element_type=jnp.float32) + bw_ref[...]
    # Padded lanes of w_y and x are both zero, so padded output lanes stay 0.
    z_ref[...] = (w_y + x).astype(z_ref.dtype)


def prepare_params(params):
    """One-time fusion/padding of the projection weights (hoisted off the call path).

    Input params hold transposed Linear weights: (in_features, out_features).
    Returns a dict with the fused theta|phi|g weight/bias and the output
    projection, zero-padded so every last dim is a multiple of 128 lanes.
    """
    in_channels, inter = params["w_theta"].shape
    c_pad = _round_up(in_channels, 128)
    i_pad = _round_up(inter, 128)

    def pad2(w, rows, cols):
        return jnp.pad(w, ((0, rows - w.shape[0]), (0, cols - w.shape[1])))

    def pad1(b, n):
        return jnp.pad(b, (0, n - b.shape[0]))

    w_qkv = jnp.concatenate(
        [pad2(params["w_theta"], c_pad, i_pad),
         pad2(params["w_phi"], c_pad, i_pad),
         pad2(params["w_g"], c_pad, i_pad)], axis=1)               # (Cpad, 3*Ipad)
    b_qkv = jnp.concatenate(
        [pad1(params["b_theta"], i_pad),
         pad1(params["b_phi"], i_pad),
         pad1(params["b_g"], i_pad)]).reshape(1, 3 * i_pad)         # (1, 3*Ipad)
    w_W = pad2(params["w_W"], i_pad, c_pad)                         # (Ipad, Cpad)
    b_W = pad1(params["b_W"], c_pad).reshape(1, c_pad)              # (1, Cpad)

    return dict(
        w_qkv=w_qkv, b_qkv=b_qkv, w_W=w_W, b_W=b_W,
        in_channels=in_channels, inter=inter, c_pad=c_pad, i_pad=i_pad,
    )


def object_relation_forward(x, prepped):
    """Apply the relation block.

    x: (N, C) for a single block (matches the PyTorch forward), or
       (B, N, C) to process B independent relation blocks in ONE pallas_call.
    prepped: output of prepare_params() (fused/padded weights, built once).
    """
    squeeze = x.ndim == 2
    if squeeze:
        x = x[None]
    b, n, c = x.shape
    assert c == prepped["in_channels"]
    c_pad = prepped["c_pad"]
    i_pad = prepped["i_pad"]
    m = b * n

    # Flatten all blocks to one (M, C) slab (free reshape), then lane-pad C.
    x2 = x.reshape(m, c)
    if c_pad != c:
        x2 = jnp.pad(x2, ((0, 0), (0, c_pad - c)))

    w_qkv, b_qkv, w_W, b_W = (prepped["w_qkv"], prepped["b_qkv"],
                              prepped["w_W"], prepped["b_W"])

    kernel = functools.partial(
        _object_relation_kernel,
        inter_pad=i_pad, block_len=n, num_blocks=b)

    cost = pl.CostEstimate(
        flops=2 * (m * c_pad * 3 * i_pad      # fused QKV projection
                   + m * m * i_pad            # theta @ phi^T
                   + m * m * i_pad            # softmax @ g
                   + m * i_pad * c_pad),      # output projection
        transcendentals=m * m,                # exp in softmax
        bytes_accessed=4 * (2 * m * c_pad + int(w_qkv.size) + int(b_qkv.size)
                            + int(w_W.size) + int(b_W.size)),
    )

    out = pl.pallas_call(
        kernel,
        out_shape=jax.ShapeDtypeStruct((m, c_pad), x.dtype),
        grid_spec=pltpu.PrefetchScalarGridSpec(
            num_scalar_prefetch=0,
            grid=(1,),                         # single step: whole batch at once
            in_specs=[
                pl.BlockSpec((m, c_pad), lambda i: (0, 0)),
                pl.BlockSpec(w_qkv.shape, lambda i: (0, 0)),
                pl.BlockSpec(b_qkv.shape, lambda i: (0, 0)),
                pl.BlockSpec(w_W.shape, lambda i: (0, 0)),
                pl.BlockSpec(b_W.shape, lambda i: (0, 0)),
            ],
            out_specs=pl.BlockSpec((m, c_pad), lambda i: (0, 0)),
        ),
        cost_estimate=cost,
    )(x2, w_qkv, b_qkv, w_W, b_W)

    out = out[:, :c].reshape(b, n, c)
    return out[0] if squeeze else out


def init_params(key, in_channels):
    """Deterministic init mimicking nn.Linear default (uniform +/- 1/sqrt(fan_in)).

    Weights are stored transposed: (in_features, out_features).
    """
    inter = in_channels // 2
    keys = jax.random.split(key, 8)

    def lin(kw, kb, fan_in, fan_out):
        bound = 1.0 / jnp.sqrt(jnp.float32(fan_in))
        w = jax.random.uniform(kw, (fan_in, fan_out), jnp.float32, -bound, bound)
        b = jax.random.uniform(kb, (fan_out,), jnp.float32, -bound, bound)
        return w, b

    w_theta, b_theta = lin(keys[0], keys[1], in_channels, inter)
    w_phi, b_phi = lin(keys[2], keys[3], in_channels, inter)
    w_g, b_g = lin(keys[4], keys[5], in_channels, inter)
    w_W, b_W = lin(keys[6], keys[7], inter, in_channels)
    return dict(
        w_theta=w_theta, b_theta=b_theta,
        w_phi=w_phi, b_phi=b_phi,
        w_g=w_g, b_g=b_g,
        w_W=w_W, b_W=b_W,
    )


def reference_forward(x, params):
    """Pure-JAX reference matching the PyTorch forward (single (N, C) block)."""
    theta_x = x @ params["w_theta"] + params["b_theta"]
    phi_x = x @ params["w_phi"] + params["b_phi"]
    g_x = x @ params["w_g"] + params["b_g"]
    f = theta_x @ phi_x.T
    f_div_c = jax.nn.softmax(f, axis=-1)
    y = f_div_c @ g_x
    w_y = y @ params["w_W"] + params["b_W"]
    return w_y + x


if __name__ == "__main__":
    # Small shapes consistent with the module: bbox_num=8 proposals,
    # in_channels=32 features each (inter_channels=16).
    bbox_num = 8
    in_channels = 32
    batch = 4  # number of independent relation blocks for the batched path

    key = jax.random.PRNGKey(0)
    k_x, k_xb, k_p = jax.random.split(key, 3)
    params = init_params(k_p, in_channels)
    prepped = jax.block_until_ready(prepare_params(params))  # one-time weight prep

    # 1) Single block -- exactly the PyTorch forward signature.
    x = jax.random.normal(k_x, (bbox_num, in_channels), jnp.float32)
    z = jax.block_until_ready(object_relation_forward(x, prepped))
    z_ref = reference_forward(x, params)
    assert z.shape == x.shape
    assert jnp.allclose(z, z_ref, atol=2e-3, rtol=2e-3), "mismatch vs reference (single)"

    # 2) Batched: many relation blocks in ONE grid step (block-diagonal mask).
    xb = jax.random.normal(k_xb, (batch, bbox_num, in_channels), jnp.float32)
    zb = jax.block_until_ready(object_relation_forward(xb, prepped))
    zb_ref = jax.vmap(lambda xi: reference_forward(xi, params))(xb)
    assert zb.shape == xb.shape
    assert jnp.allclose(zb, zb_ref, atol=2e-3, rtol=2e-3), "mismatch vs reference (batched)"

    print("KERNEL_OK")
</pallas_src>

<mosaic_0001>
module attributes {stable_mosaic.version = 11 : i64} {
  func.func @_object_relation_kernel(%arg0: i32, %arg1: memref<8x128xf32, #tpu.memory_space<vmem>>, %arg2: memref<128x384xf32, #tpu.memory_space<vmem>>, %arg3: memref<1x384xf32, #tpu.memory_space<vmem>>, %arg4: memref<128x128xf32, #tpu.memory_space<vmem>>, %arg5: memref<1x128xf32, #tpu.memory_space<vmem>>, %arg6: memref<8x128xf32, #tpu.memory_space<vmem>>) attributes {dimension_semantics = [#tpu.dimension_semantics<arbitrary>], iteration_bounds = array<i64: 1>, scalar_prefetch = 0 : i64, scratch_operands = 0 : i64, tpu.core_type = #tpu.core_type<tc>, window_params = [{pipeline_mode = #tpu.pipeline_mode<synchronous>, transform_indices = @transform_0, window_bounds = array<i64: 8, 128>}, {pipeline_mode = #tpu.pipeline_mode<synchronous>, transform_indices = @transform_1, window_bounds = array<i64: 128, 384>}, {pipeline_mode = #tpu.pipeline_mode<synchronous>, transform_indices = @transform_2, window_bounds = array<i64: 1, 384>}, {pipeline_mode = #tpu.pipeline_mode<synchronous>, transform_indices = @transform_3, window_bounds = array<i64: 128, 128>}, {pipeline_mode = #tpu.pipeline_mode<synchronous>, transform_indices = @transform_4, window_bounds = array<i64: 1, 128>}, {pipeline_mode = #tpu.pipeline_mode<synchronous>, transform_indices = @transform_5, window_bounds = array<i64: 8, 128>}]} {
    %c0 = arith.constant 0 : index
    %c0_0 = arith.constant 0 : index
    %0 = vector.load %arg1[%c0, %c0_0] : memref<8x128xf32, #tpu.memory_space<vmem>>, vector<8x128xf32>
    %c0_1 = arith.constant 0 : index
    %c0_2 = arith.constant 0 : index
    %1 = vector.load %arg2[%c0_1, %c0_2] : memref<128x384xf32, #tpu.memory_space<vmem>>, vector<128x384xf32>
    %cst = arith.constant dense<0.000000e+00> : vector<8x384xf32>
    %2 = tpu.matmul %0, %1, %cst {dimension_numbers = #tpu.dot_dimension_numbers<[1], [0], [0], [1], [0, 0, 1, 1], [], []>} : vector<8x128xf32>, vector<128x384xf32>, vector<8x384xf32> -> vector<8x384xf32>
    %c0_3 = arith.constant 0 : index
    %c0_4 = arith.constant 0 : index
    %3 = vector.load %arg3[%c0_3, %c0_4] : memref<1x384xf32, #tpu.memory_space<vmem>>, vector<1x384xf32>
    %4 = vector.broadcast %3 : vector<1x384xf32> to vector<8x384xf32>
    %5 = arith.addf %2, %4 : vector<8x384xf32>
    %6 = vector.extract_strided_slice %5 {offsets = [0, 0], sizes = [8, 128], strides = [1, 1]} : vector<8x384xf32> to vector<8x128xf32>
    %7 = vector.extract_strided_slice %5 {offsets = [0, 128], sizes = [8, 128], strides = [1, 1]} : vector<8x384xf32> to vector<8x128xf32>
    %8 = vector.extract_strided_slice %5 {offsets = [0, 256], sizes = [8, 128], strides = [1, 1]} : vector<8x384xf32> to vector<8x128xf32>
    %cst_5 = arith.constant dense<0.000000e+00> : vector<8x8xf32>
    %9 = tpu.matmul %6, %7, %cst_5 {dimension_numbers = #tpu.dot_dimension_numbers<[1], [1], [0], [0], [0, 0, 1, 0], [], []>} : vector<8x128xf32>, vector<8x128xf32>, vector<8x8xf32> -> vector<8x8xf32>
    %cst_6 = arith.constant dense<0xFF800000> : vector<8xf32>
    %10 = vector.multi_reduction <maximumf>, %9, %cst_6 [1] : vector<8x8xf32> to vector<8xf32>
    %11 = vector.shape_cast %10 : vector<8xf32> to vector<8x1xf32>
    %12 = vector.broadcast %11 : vector<8x1xf32> to vector<8x8xf32>
    %13 = arith.subf %9, %12 : vector<8x8xf32>
    %14 = math.exp %13 : vector<8x8xf32>
    %cst_7 = arith.constant dense<0.000000e+00> : vector<8xf32>
    %15 = vector.multi_reduction <add>, %14, %cst_7 [1] : vector<8x8xf32> to vector<8xf32>
    %16 = vector.shape_cast %15 : vector<8xf32> to vector<8x1xf32>
    %17 = tpu.reciprocal %16 {approx = true} : vector<8x1xf32> -> vector<8x1xf32>
    %18 = vector.broadcast %17 : vector<8x1xf32> to vector<8x8xf32>
    %19 = arith.mulf %14, %18 : vector<8x8xf32>
    %cst_8 = arith.constant dense<0.000000e+00> : vector<8x128xf32>
    %20 = tpu.matmul %19, %8, %cst_8 {dimension_numbers = #tpu.dot_dimension_numbers<[1], [0], [0], [1], [0, 0, 1, 1], [], []>} : vector<8x8xf32>, vector<8x128xf32>, vector<8x128xf32> -> vector<8x128xf32>
    %c0_9 = arith.constant 0 : index
    %c0_10 = arith.constant 0 : index
    %21 = vector.load %arg4[%c0_9, %c0_10] : memref<128x128xf32, #tpu.memory_space<vmem>>, vector<128x128xf32>
    %cst_11 = arith.constant dense<0.000000e+00> : vector<8x128xf32>
    %22 = tpu.matmul %20, %21, %cst_11 {dimension_numbers = #tpu.dot_dimension_numbers<[1], [0], [0], [1], [0, 0, 1, 1], [], []>} : vector<8x128xf32>, vector<128x128xf32>, vector<8x128xf32> -> vector<8x128xf32>
    %c0_12 = arith.constant 0 : index
    %c0_13 = arith.constant 0 : index
    %23 = vector.load %arg5[%c0_12, %c0_13] : memref<1x128xf32, #tpu.memory_space<vmem>>, vector<1x128xf32>
    %24 = vector.broadcast %23 : vector<1x128xf32> to vector<8x128xf32>
    %25 = arith.addf %22, %24 : vector<8x128xf32>
    %26 = arith.addf %25, %0 : vector<8x128xf32>
    %c0_14 = arith.constant 0 : index
    %c0_15 = arith.constant 0 : index
    %27 = vector.load %arg6[%c0_14, %c0_15] : memref<8x128xf32, #tpu.memory_space<vmem>>, vector<8x128xf32>
    tpu.vector_store %arg6[%c0_14, %c0_15], %26 {strides = array<i32>} : memref<8x128xf32, #tpu.memory_space<vmem>>, vector<8x128xf32>,
    return
  }
  func.func @transform_0(%arg0: i32) -> (i32, i32) {
    %c0_i32 = arith.constant 0 : i32
    %c0_i32_0 = arith.constant 0 : i32
    %c0_i32_1 = arith.constant 0 : i32
    return %c0_i32, %c0_i32_0 : i32, i32
  }
  func.func @transform_1(%arg0: i32) -> (i32, i32) {
    %c0_i32 = arith.constant 0 : i32
    %c0_i32_0 = arith.constant 0 : i32
    %c0_i32_1 = arith.constant 0 : i32
    return %c0_i32, %c0_i32_0 : i32, i32
  }
  func.func @transform_2(%arg0: i32) -> (i32, i32) {
    %c0_i32 = arith.constant 0 : i32
    %c0_i32_0 = arith.constant 0 : i32
    %c0_i32_1 = arith.constant 0 : i32
    return %c0_i32, %c0_i32_0 : i32, i32
  }
  func.func @transform_3(%arg0: i32) -> (i32, i32) {
    %c0_i32 = arith.constant 0 : i32
    %c0_i32_0 = arith.constant 0 : i32
    %c0_i32_1 = arith.constant 0 : i32
    return %c0_i32, %c0_i32_0 : i32, i32
  }
  func.func @transform_4(%arg0: i32) -> (i32, i32) {
    %c0_i32 = arith.constant 0 : i32
    %c0_i32_0 = arith.constant 0 : i32
    %c0_i32_1 = arith.constant 0 : i32
    return %c0_i32, %c0_i32_0 : i32, i32
  }
  func.func @transform_5(%arg0: i32) -> (i32, i32) {
    %c0_i32 = arith.constant 0 : i32
    %c0_i32_0 = arith.constant 0 : i32
    %c0_i32_1 = arith.constant 0 : i32
    return %c0_i32, %c0_i32_0 : i32, i32
  }
}

</mosaic_0001>

<bundles_post_ra>
// kernel: tpu_custom_call.1
= control target key start
LH: loop header
LB: loop body
LE: loop exit
PB: predicated region body
PF: predicated region fallthrough
CT: control target
= control target key end

     0   :  { %10 = vsyncpa [#allocation3], 0  ;;  %s972_s0 = inlined_call_operand.hbm [shape: f32[8,128], index: 0, kind: input, shape index: {}]   ;;  %s973_s1 = inlined_call_operand.hbm [shape: f32[128,384], index: 1, kind: input, shape index: {}]   ;;  %s974_s2 = inlined_call_operand.vmem [shape: f32[1,384], index: 2, kind: input, shape index: {}]   ;;  %s975_s3 = inlined_call_operand.hbm [shape: f32[128,128], index: 3, kind: input, shape index: {}]   ;;  %s976_s4 = inlined_call_operand.vmem [shape: f32[1,128], index: 4, kind: input, shape index: {}]   ;;  %s977_s5 = inlined_call_operand.hbm [shape: f32[8,128], index: 5, kind: output, shape index: {}]  }
   0x1   :  { %11 = vsyncpa [#allocation6], 0 }
   0x2   :  { %12 = vsyncpa [#allocation4], 0  ;;  %s842_s18 = smov [#allocation5]   ;;  %s748_s22 = scalar_lea.hbm %s973_s1, 6144 }
   0x3   :  { %s28_s19 = sshll.u32 %s842_s18, 4  ;;  %p749_p0 = scmp.ne.s32.totalorder %s973_s1, %s748_s22  ;;  %s29_s19 = int_to_ptr.vmem [resolvable:$true] %s28_s19 }
   0x4   :  { %p752_p1 = scmp.lt.u32.totalorder %s748_s22, %s973_s1 }
   0x6   :  { %p754_p2 = pnand %p752_p1, %p749_p0 }
   0x8   :  { %757 = shalt.err (!%p754_p2)
}
   0x9   :  { %s758_s27 = scalar_lea.vmem %s29_s19, 6144  ;;  %p763_p4 = scmp.lt.s32.totalorder %s29_s19, %s29_s19 }
   0xa   :  { %p759_p3 = scmp.ne.s32.totalorder %s29_s19, %s758_s27  ;;  %p764_p5 = scmp.lt.s32.totalorder %s758_s27, %s758_s27 }
   0xc   :  { %p765_p6 = por %p764_p5, %p763_p4 }
   0xe   :  { %p766_p7 = pnand %p765_p6, %p759_p3 }
  0x10   :  { %769 = shalt.err (!%p766_p7)
}
  0x11   :  { %s843_s28 = smov 384   ;;  %s844_s29 = smov 24  }
  0x12   :  { %34 = dma.hbm_to_vmem [thread:$0]  %s973_s1, 6144, %s29_s19, [#allocation6], %s843_s28, %s843_s28, %s844_s29  }
  0x13   :  { %s845_s7 = smov [#allocation2]   ;;  %s846_s9 = smov [#allocation7]  }
  0x14   :  { %s19_s8 = sshll.u32 %s845_s7, 4  ;;  %s42_s10 = sshll.u32 %s846_s9, 4  ;;  %s20_s8 = int_to_ptr.vmem [resolvable:$true] %s19_s8  ;;  %s43_s10 = int_to_ptr.vmem [resolvable:$true] %s42_s10 }
  0x15   :  { %s770_s13 = scalar_lea.hbm %s972_s0, 128 }
  0x16   :  { %p771_p8 = scmp.ne.s32.totalorder %s972_s0, %s770_s13  ;;  %p774_p9 = scmp.lt.u32.totalorder %s770_s13, %s972_s0 }
  0x18   :  { %p776_p10 = pnand %p774_p9, %p771_p8 }
  0x1a   :  { %779 = shalt.err (!%p776_p10)
}
  0x1b   :  { %s780_s1 = scalar_lea.vmem %s20_s8, 128  ;;  %p785_p12 = scmp.lt.s32.totalorder %s20_s8, %s20_s8 }
  0x1c   :  { %p781_p11 = scmp.ne.s32.totalorder %s20_s8, %s780_s1  ;;  %p786_p13 = scmp.lt.s32.totalorder %s780_s1, %s780_s1 }
  0x1e   :  { %p787_p0 = por %p786_p13, %p785_p12 }
  0x20   :  { %p788_p1 = pnand %p787_p0, %p781_p11 }
  0x22   :  { %791 = shalt.err (!%p788_p1)
}
  0x23   :  { %22 = dma.hbm_to_vmem [thread:$0]  %s972_s0, 128, %s20_s8, [#allocation3]  }
  0x24   :  { %s792_s22 = scalar_lea.hbm %s975_s3, 2048 }
  0x25   :  { %p793_p2 = scmp.ne.s32.totalorder %s975_s3, %s792_s22  ;;  %p796_p3 = scmp.lt.u32.totalorder %s792_s22, %s975_s3 }
  0x27   :  { %p798_p4 = pnand %p796_p3, %p793_p2 }
  0x29   :  { %801 = shalt.err (!%p798_p4)
}
  0x2a   :  { %s802_s27 = scalar_lea.vmem %s43_s10, 2048  ;;  %p807_p6 = scmp.lt.s32.totalorder %s43_s10, %s43_s10 }
  0x2b   :  { %p803_p5 = scmp.ne.s32.totalorder %s43_s10, %s802_s27  ;;  %p808_p7 = scmp.lt.s32.totalorder %s802_s27, %s802_s27 }
  0x2d   :  { %p809_p8 = por %p808_p7, %p807_p6 }
  0x2f   :  { %p810_p9 = pnand %p809_p8, %p803_p5 }
  0x31   :  { %813 = shalt.err (!%p810_p9)
}
  0x32   :  { %s847_s0 = smov 128   ;;  %s848_s28 = smov 8  }
  0x33   :  { %48 = dma.hbm_to_vmem [thread:$0]  %s975_s3, 2048, %s43_s10, [#allocation6], %s847_s0, %s847_s0, %s848_s28  }
  0x34   :  { %836 = dma.done.wait [#allocation3], 128  }
  0x35   :  { %837 = vsyncadd [#allocation3], 4294967168 }
  0x36   :  { %838 = dma.done.wait [#allocation6], 8192  }
  0x37   :  { %839 = vsyncadd [#allocation6], 4294959104  ;;  %v849_v0 = vmov 0.0   ;;  %v850_v1 = vmov 0.0|0.0   ;;  %v62_v2 = vld [vmem:[#allocation5 + $0x8] sm:$0xff]  ;;  %v65_v3 = vld [vmem:[#allocation5 + $0x20] sm:$0xff] }
  0x38   :  { %190 = vmatprep.mubr.f32.mxu0 %v849_v0  ;;  %685 = vmatprep.subr.bf16.mxu1 %v850_v1  ;;  %v61_v4 = vld [vmem:[#allocation5] sm:$0xff]  ;;  %v653_v5 = vpack.c.bf16 %v65_v3, %v62_v2  ;;  %v64_v6 = vld [vmem:[#allocation5 + $0x18] sm:$0xff]  ;;  %v71_v8 = vld [vmem:[#allocation5 + $0x50] sm:$0xff]  ;;  %vm851_vm0 = vmmov 0   ;;  %vm337_vm1 = vcmask 64512   ;;  %s852_s8 = smov [#allocation8]  }
  0x39   :  { %v68_v7 = vld [vmem:[#allocation5 + $0x38] sm:$0xff]  ;;  %v655_v9 = vpack.c.bf16 %v64_v6, %v61_v4  ;;  %v67_v11 = vld [vmem:[#allocation5 + $0x30] sm:$0xff]  ;;  %v70_v12 = vld [vmem:[#allocation5 + $0x48] sm:$0xff]  ;;  %605 = vmatprep.mubr.msk.f32.mxu1 %vm851_vm0, %v849_v0  ;;  %s523_s9 = sshll.u32 %s852_s8, 4  ;;  %s524_s9 = int_to_ptr.vmem [resolvable:$true] %s523_s9 }
  0x3a   :  { %v657_v10 = vpack.c.bf16 %v71_v8, %v68_v7  ;;  %v74_v13 = vld [vmem:[#allocation5 + $0x68] sm:$0xff]  ;;  %654 = vmatprep.subr.bf16.mxu0 %v653_v5  ;;  %v77_v14 = vld [vmem:[#allocation5 + $0x80] sm:$0xff]  ;;  %v659_v15 = vpack.c.bf16 %v70_v12, %v67_v11  ;;  %v76_v18 = vld [vmem:[#allocation5 + $0x78] sm:$0xff]  ;;  %s814_s10 = scalar_lea.vmem %s524_s9, 128  ;;  %p819_p11 = scmp.lt.s32.totalorder %s524_s9, %s524_s9 }
  0x3b   :  { %656 = vmatpush1.bf16.msra.mxu0 %v655_v9  ;;  %v661_v16 = vpack.c.bf16 %v77_v14, %v74_v13  ;;  %v73_v17 = vld [vmem:[#allocation5 + $0x60] sm:$0xff]  ;;  %v80_v19 = vld [vmem:[#allocation5 + $0x98] sm:$0xff]  ;;  %v83_v20 = vld [vmem:[#allocation5 + $0xb0] sm:$0xff]  ;;  %v111_v13 = vlaneseq  ;;  %p815_p10 = scmp.ne.s32.totalorder %s524_s9, %s814_s10  ;;  %p820_p12 = scmp.lt.s32.totalorder %s814_s10, %s814_s10 }
  0x3c   :  { %658 = vmatprep.subr.bf16.mxu0 %v657_v10  ;;  %v663_v21 = vpack.c.bf16 %v76_v18, %v73_v17  ;;  %v665_v22 = vpack.c.bf16 %v83_v20, %v80_v19  ;;  %v79_v23 = vld [vmem:[#allocation5 + $0x90] sm:$0xff]  ;;  %v82_v24 = vld [vmem:[#allocation5 + $0xa8] sm:$0xff]  ;;  %v89_v26 = vld [vmem:[#allocation5 + $0xe0] sm:$0xff] }
  0x3d   :  { %v86_v25 = vld [vmem:[#allocation5 + $0xc8] sm:$0xff]  ;;  %v63_v27 = vld [vmem:[#allocation5 + $0x10] sm:$0xff]  ;;  %v69_v29 = vld [vmem:[#allocation5 + $0x40] sm:$0xff]  ;;  %v667_v30 = vpack.c.bf16 %v82_v24, %v79_v23  ;;  %v112_v14 = vshrl.u32 %v111_v13, 7  ;;  %p821_p13 = por %p820_p12, %p819_p11 }
  0x3e   :  { %v66_v28 = vld [vmem:[#allocation5 + $0x28] sm:$0xff]  ;;  %v72_v32 = vld [vmem:[#allocation5 + $0x58] sm:$0xff]  ;;  %v669_v33 = vpack.c.bf16 %v89_v26, %v86_v25  ;;  %v85_v34 = vld [vmem:[#allocation5 + $0xc0] sm:$0xff] }
  0x3f   :  { %660 = vmatpush1.bf16.msra.mxu0 %v659_v15  ;;  %v686_v31 = vpack.c.bf16 %v66_v28, %v63_v27  ;;  %v88_v35 = vld [vmem:[#allocation5 + $0xd8] sm:$0xff]  ;;  %v95_v37 = vld [vmem:[#allocation5 + $0x110] sm:$0xff]  ;;  %v689_v38 = vpack.c.bf16 %v72_v32, %v69_v29  ;;  %v78_v40 = vld [vmem:[#allocation5 + $0x88] sm:$0xff]  ;;  %v117_v15 = vsub.s32 1, %v112_v14  ;;  %v113_v17 = vsub.s32 0, %v112_v14  ;;  %p822_p0 = pnand %p821_p13, %p815_p10 }
  0x40   :  { %662 = vmatprep.subr.bf16.mxu0 %v661_v16  ;;  %v92_v36 = vld [vmem:[#allocation5 + $0xf8] sm:$0xff]  ;;  %v75_v39 = vld [vmem:[#allocation5 + $0x70] sm:$0xff]  ;;  %v671_v41 = vpack.c.bf16 %v88_v35, %v85_v34  ;;  %v94_v44 = vld [vmem:[#allocation5 + $0x108] sm:$0xff]  ;;  %v121_v24 = vsub.s32 2, %v112_v14 }
  0x41   :  { %687 = vmatpush3.bf16.msra.mxu1 %v686_v31  ;;  %v673_v42 = vpack.c.bf16 %v95_v37, %v92_v36  ;;  %v91_v43 = vld [vmem:[#allocation5 + $0xf0] sm:$0xff]  ;;  %v98_v45 = vld [vmem:[#allocation5 + $0x128] sm:$0xff]  ;;  %v101_v46 = vld [vmem:[#allocation5 + $0x140] sm:$0xff]  ;;  %v692_v47 = vpack.c.bf16 %v78_v40, %v75_v39 }
  0x42   :  { %688 = vmatprep.subr.bf16.mxu1 %v850_v1  ;;  %v81_v48 = vld [vmem:[#allocation5 + $0xa0] sm:$0xff]  ;;  %v84_v49 = vld [vmem:[#allocation5 + $0xb8] sm:$0xff]  ;;  %v675_v50 = vpack.c.bf16 %v94_v44, %v91_v43  ;;  %v677_v51 = vpack.c.bf16 %v101_v46, %v98_v45  ;;  %v107_v55 = vld [vmem:[#allocation5 + $0x170] sm:$0xff] }
  0x43   :  { %664 = vmatpush1.bf16.msra.mxu0 %v663_v21  ;;  %v97_v52 = vld [vmem:[#allocation5 + $0x120] sm:$0xff]  ;;  %v100_v53 = vld [vmem:[#allocation5 + $0x138] sm:$0xff]  ;;  %v695_v56 = vpack.c.bf16 %v84_v49, %v81_v48  ;;  %v87_v57 = vld [vmem:[#allocation5 + $0xd0] sm:$0xff] }
  0x44   :  { %666 = vmatprep.subr.bf16.mxu0 %v665_v22  ;;  %v104_v54 = vld [vmem:[#allocation5 + $0x158] sm:$0xff]  ;;  %v90_v58 = vld [vmem:[#allocation5 + $0xe8] sm:$0xff]  ;;  %v679_v59 = vpack.c.bf16 %v100_v53, %v97_v52  ;;  %v103_v61 = vld [vmem:[#allocation5 + $0x150] sm:$0xff] }
  0x45   :  { %690 = vmatpush3.bf16.msra.mxu1 %v689_v38  ;;  %v681_v60 = vpack.c.bf16 %v107_v55, %v104_v54  ;;  %v106_v62 = vld [vmem:[#allocation5 + $0x168] sm:$0xff]  ;;  %v698_v63 = vpack.c.bf16 %v90_v58, %v87_v57  ;;  %v93_v2 = vld [vmem:[#allocation5 + $0x100] sm:$0xff]  ;;  %v96_v3 = vld [vmem:[#allocation5 + $0x118] sm:$0xff] }
  0x46   :  { %691 = vmatprep.subr.bf16.mxu1 %v850_v1  ;;  %v683_v4 = vpack.c.bf16 %v106_v62, %v103_v61  ;;  %v701_v5 = vpack.c.bf16 %v96_v3, %v93_v2  ;;  %v99_v6 = vld [vmem:[#allocation5 + $0x130] sm:$0xff]  ;;  %v102_v7 = vld [vmem:[#allocation5 + $0x148] sm:$0xff]  ;;  %v926_v8 = vld [vmem:[#allocation2] sm:$0xff] }
  0x47   :  { %668 = vmatpush1.bf16.msra.mxu0 %v667_v30  ;;  %v704_v9 = vpack.c.bf16 %v102_v7, %v99_v6  ;;  %v105_v10 = vld [vmem:[#allocation5 + $0x160] sm:$0xff]  ;;  %v108_v11 = vld [vmem:[#allocation5 + $0x178] sm:$0xff]  ;;  %v423_v37 = vld [vmem:[#allocation7 + $0x8] sm:$0xff] }
  0x48   :  { %670 = vmatprep.subr.bf16.mxu0 %v669_v33  ;;  %v707_v12 = vpack.c.bf16 %v108_v11, %v105_v10  ;;  %v109_v16 = vld [vmem:[%s974_s2] sm:$0x7]  ;;  %v424_v38 = vld [vmem:[#allocation7 + $0x10] sm:$0xff]  ;;  %v427_v43 = vld [vmem:[#allocation7 + $0x28] sm:$0xff] }
  0x49   :  { %693 = vmatpush3.bf16.msra.mxu1 %v692_v47  ;;  %v118_v18 = vrot.slane %v109_v16, %v117_v15  ;;  %v114_v20 = vrot.slane %v109_v16, %v113_v17  ;;  %v122_v25 = vrot.slane %v109_v16, %v121_v24  ;;  %v425_v40 = vld [vmem:[#allocation7 + $0x18] sm:$0xff]  ;;  %v428_v45 = vld [vmem:[#allocation7 + $0x30] sm:$0xff]  ;;  %v430_v48 = vld [vmem:[#allocation7 + $0x40] sm:$0xff] }
  0x4a   :  { %694 = vmatprep.subr.bf16.mxu1 %v850_v1  ;;  %v429_v46 = vld [vmem:[#allocation7 + $0x38] sm:$0xff]  ;;  %v431_v49 = vld [vmem:[#allocation7 + $0x48] sm:$0xff]  ;;  %v434_v54 = vld [vmem:[#allocation7 + $0x60] sm:$0xff] }
  0x4b   :  { %672 = vmatpush1.bf16.msra.mxu0 %v671_v41  ;;  %v713_v41 = vpack.c.bf16 %v425_v40, %v424_v38  ;;  %v719_v47 = vpack.c.bf16 %v429_v46, %v428_v45  ;;  %v433_v52 = vld [vmem:[#allocation7 + $0x58] sm:$0xff]  ;;  %v435_v55 = vld [vmem:[#allocation7 + $0x68] sm:$0xff]  ;;  %v436_v57 = vld [vmem:[#allocation7 + $0x70] sm:$0xff] }
  0x4c   :  { %674 = vmatprep.subr.bf16.mxu0 %v673_v42  ;;  %v426_v42 = vld [vmem:[#allocation7 + $0x20] sm:$0xff]  ;;  %v437_v58 = vld [vmem:[#allocation7 + $0x78] sm:$0xff] }
  0x4d   :  { %696 = vmatpush3.bf16.msra.mxu1 %v695_v56  ;;  %v716_v44 = vpack.c.bf16 %v427_v43, %v426_v42  ;;  %v728_v56 = vpack.c.bf16 %v435_v55, %v434_v54  ;;  %v534_v3 = vld [vmem:[%s976_s4] ss:$0 sm:$0xff] }
  0x4e   :  { %697 = vmatprep.subr.bf16.mxu1 %v850_v1 }
  0x4f   :  { %676 = vmatpush1.bf16.msra.mxu0 %v675_v50  ;;  %v722_v50 = vpack.c.bf16 %v431_v49, %v430_v48 }
  0x50   :  { %678 = vmatprep.subr.bf16.mxu0 %v677_v51  ;;  %v432_v51 = vld [vmem:[#allocation7 + $0x50] sm:$0xff] }
  0x51   :  { %699 = vmatpush3.bf16.msra.mxu1 %v698_v63  ;;  %v725_v53 = vpack.c.bf16 %v433_v52, %v432_v51 }
  0x52   :  { %700 = vmatprep.subr.bf16.mxu1 %v850_v1 }
  0x53   :  { %680 = vmatpush1.bf16.msra.mxu0 %v679_v59  ;;  %v731_v59 = vpack.c.bf16 %v437_v58, %v436_v57 }
  0x54   :  { %682 = vmatprep.subr.bf16.mxu0 %v681_v60 }
  0x55   :  { %702 = vmatpush3.bf16.msra.mxu1 %v701_v5 }
  0x56   :  { %703 = vmatprep.subr.bf16.mxu1 %v850_v1 }
  0x57   :  { %684 = vmatpush1.bf16.msra.mxu0 %v683_v4 }
  0x58   :  { %709 = vmatprep.subr.bf16.mxu0 %v850_v1 }
  0x59   :  { %705 = vmatpush3.bf16.msra.mxu1 %v704_v9 }
  0x5a   :  { %191 = vmatmul.mubr.f32.vlgmr.msra.gmra.mrb[0].mxu0 %v926_v8  ;;  %706 = vmatprep.subr.bf16.mxu1 %v850_v1 }
  0x5b   :  { %650 = vmatprep.mubr.msk.f32.mxu0 %vm851_vm0, %v849_v0 }
  0x5d   :  { %708 = vmatpush3.bf16.msra.mxu1 %v707_v12 }
  0x5e   :  { %608 = vmatprep.subr.mxu1 %v849_v0 }
  0x60   :  { %606 = vmatmul.mubr.f32.vlgmr.msra.gmra.mrb[0].mxu1 %v926_v8 }
  0x61   :  { %610 = vmatprep.mubr.msk.f32.mxu1 %vm851_vm0, %v849_v0 }
 0x12d   :  { %v192_v19 = vpop.f32.mrb[0].mxu0 }
 0x12e   :  { %v194_v21 = vpop.f32.mrb[1].mxu0  ;;  %v193_v23 = vadd.f32 %v192_v19, %v114_v20 }
 0x12f   :  { %v195_v22 = vadd.f32 %v194_v21, %v118_v18 }
 0x131   :  { %609 = vmatpush3.xpose.msra.mxu1 %v195_v22 }
 0x132   :  { %613 = vmatprep.subr.mxu1 %v849_v0 }
 0x133   :  { %v263_v26 = vpop.f32.mrb[0].mxu1 }
 0x134   :  { %611 = vmatmul.mubr.f32.vlgmr.msra.gmra.mrb[2].mxu1 %v193_v23  ;;  %v264_v27 = vadd.f32 %v263_v26, %v122_v25  ;;  %v607_v28 = vpop.f32.mrb[1].mxu1 }
 0x135   :  { %615 = vmatprep.mubr.msk.f32.mxu1 %vm851_vm0, %v849_v0  ;;  %v422_v0 = vld [vmem:[#allocation7] sm:$0xff] }
 0x136   :  { %614 = vmatpush3.msra.mxu1 %v264_v27  ;;  %v710_v39 = vpack.c.bf16 %v423_v37, %v422_v0 }
 0x138   :  { %711 = vmatpush3.bf16.msra.mxu0 %v710_v39 }
 0x139   :  { %712 = vmatprep.subr.bf16.mxu0 %v850_v1 }
 0x13c   :  { %714 = vmatpush3.bf16.msra.mxu0 %v713_v41 }
 0x13d   :  { %715 = vmatprep.subr.bf16.mxu0 %v850_v1 }
 0x140   :  { %717 = vmatpush3.bf16.msra.mxu0 %v716_v44 }
 0x141   :  { %718 = vmatprep.subr.bf16.mxu0 %v850_v1 }
 0x144   :  { %720 = vmatpush3.bf16.msra.mxu0 %v719_v47 }
 0x145   :  { %721 = vmatprep.subr.bf16.mxu0 %v850_v1 }
 0x148   :  { %723 = vmatpush3.bf16.msra.mxu0 %v722_v50 }
 0x149   :  { %724 = vmatprep.subr.bf16.mxu0 %v850_v1 }
 0x14c   :  { %726 = vmatpush3.bf16.msra.mxu0 %v725_v53 }
 0x14d   :  { %727 = vmatprep.subr.bf16.mxu0 %v850_v1 }
 0x150   :  { %729 = vmatpush3.bf16.msra.mxu0 %v728_v56 }
 0x151   :  { %730 = vmatprep.subr.bf16.mxu0 %v850_v1 }
 0x154   :  { %732 = vmatpush3.bf16.msra.mxu0 %v731_v59 }
 0x207   :  { %v333_v29 = vpop.f32.mrb[2].mxu1 }
 0x208   :  { %v612_v30 = vpop.f32.mrb[3].mxu1  ;;  %v338_v31 = vsel %vm337_vm1, %v333_v29, -inf }
 0x209   :  { %339 = vmax.xlane.f32.xlu0 %v338_v31 }
 0x296   :  { %v340_v32 = vpop.xlane.xlu0 %339 }
 0x297   :  { %v341_v33 = vsub.f32 %v333_v29, %v340_v32 }
 0x299   :  { %v342_v34 = vmul.f32 1.442695, %v341_v33 }
 0x29b   :  { %744 = vpow2.f32 %v342_v34 }
 0x2a5   :  { %v745_v35 = vpop.eup %744 }
 0x2a6   :  { %v344_v36 = vsel %vm337_vm1, %v745_v35, 0.0 }
 0x2a7   :  { %345 = vadd.xlane.f32.xlu0 %v344_v36 }
 0x334   :  { %v346_v60 = vpop.xlane.xlu0 %345 }
 0x335   :  { %746 = vrcp.f32 %v346_v60 }
 0x33f   :  { %v747_v61 = vpop.eup %746 }
 0x340   :  { %v348_v62 = vmul.f32 %v747_v61, %v745_v35 }
 0x342   :  { %616 = vmatmul.mubr.msk.f32.vlgmr.msra.gmra.mrb[4].mxu1 %vm337_vm1, %v348_v62 }
 0x415   :  { %v418_v63 = vpop.f32.mrb[4].mxu1 }
 0x416   :  { %v617_v2 = vpop.f32.mrb[5].mxu1  ;;  %651 = vmatmul.mubr.f32.vlgmr.msra.gmra.mrb[2].mxu0 %v418_v63 }
 0x4e9   :  { %v511_v4 = vpop.f32.mrb[2].mxu0 }
 0x4ea   :  { %v512_v5 = vadd.f32 %v534_v3, %v511_v4  ;;  %v652_v6 = vpop.f32.mrb[3].mxu0 }
 0x4ec   :  { %v515_v1 = vadd.f32 %v512_v5, %v926_v8 }
 0x4ee   :  { %516 = vst [vmem:[#allocation8] sm:$0xff] %v515_v1 }
 0x4ef   :  { %825 = shalt.err (!%p822_p0)
}
 0x4f0   :  { %s826_s4 = scalar_lea.hbm %s977_s5, 128 }
 0x4f1   :  { %p827_p1 = scmp.ne.s32.totalorder %s977_s5, %s826_s4  ;;  %p830_p2 = scmp.lt.u32.totalorder %s826_s4, %s977_s5 }
 0x4f3   :  { %p832_p3 = pnand %p830_p2, %p827_p1 }
 0x4f5   :  { %835 = shalt.err (!%p832_p3)
}
 0x4f6   :  { %526 = dma.vmem_to_hbm [thread:$0]  %s524_s9, 128, %s977_s5, [#allocation4]  }
 0x4f7   :  { %840 = dma.done.wait [#allocation4], 128  }
 0x4f8   :  { %841 = vsyncadd [#allocation4], 4294967168 }
 0x4f9   :  { %530 = vsyncpa [#allocation3], 1 }
 0x4fa   :  { %531 = vsyncpa [#allocation6], 1 }
 0x4fb   :  { %532 = vsyncpa [#allocation4], 1 }

</bundles_post_ra>
